<compile_context>
chip_gen: v6e
topology: v6e:2x2x1
jax: 0.10.0
libtpu: 0.0.40
codegen_flags: <defaults>
</compile_context>

<pallas_src>
import jax
import jax.numpy as jnp
from jax.experimental import pallas as pl
from jax.experimental.pallas import tpu as pltpu


def _round_up(x, m):
    return ((x + m - 1) // m) * m


def _pick_tile(batch):
    """Default batch tile (multiple of 128)."""
    b128 = _round_up(max(batch, 1), 128)
    if b128 <= 256:
        # Small-batch latency path: a single step loads weights once and pays
        # one fixed per-step overhead.
        return b128
    # Large batch: at least 2 grid steps (so the 'parallel' axis can shard
    # across v7x's two TensorCores), tiles as big as possible but capped so
    # double-buffered input + the f32 output tiles fit v5e's 16 MiB scoped
    # VMEM default (v6e/v7x have 32 MiB, so the same cap is safe there).
    half = _round_up(pl.cdiv(b128, 2), 128)
    return min(half, 8192)


def _make_kernel(emit_probs):
    def kernel(xT_ref, w1_ref, b1_ref, w2_ref, b2_ref, norm_ref, *rest):
        # Batch-in-lanes layout: lanes = (padded) batch tile, sublanes = feat.
        xT = xT_ref[...]                                       # [C, TB]

        # Linear 1 (PyTorch layout W1 [H, C]):  h = W1 @ x^T + b1 -> [H, TB]
        # (bf16 x bf16 -> f32 accumulate on the fast-path default)
        h = jnp.dot(w1_ref[...], xT,
                    preferred_element_type=jnp.float32) + b1_ref[...]

        # ELU (alpha = 1.0); everything from here on is float32.
        h = jnp.where(h > 0, h, jnp.exp(h) - 1.0)

        # Linear 2 (W2 [K, H]):  logits = W2 @ h + b2 -> [K, TB]
        logits = jnp.dot(w2_ref[...], h,
                         preferred_element_type=jnp.float32) + b2_ref[...]

        # OneHotCategorical normalization: logits - logsumexp over features.
        m = jnp.max(logits, axis=0, keepdims=True)             # [1, TB]
        z = logits - m
        sumexp = jnp.sum(jnp.exp(z), axis=0, keepdims=True)    # [1, TB]
        norm = z - jnp.log(sumexp)
        norm_ref[...] = norm
        if emit_probs:
            # Exactly consistent with the logits: probs = exp(norm_logits).
            rest[0][...] = jnp.exp(norm)
    return kernel


def categorical_network_forward(context, w1, b1, w2, b2, *, tile_b=None,
                                use_bf16_matmul=True, return_probs=True,
                                transposed_io=False):
    """CategoricalNetwork forward (Linear -> ELU -> Linear -> softmax head).

    Args (PyTorch nn.Linear layout):
      context: [B, C] float32 (or [C, B] if transposed_io=True)
      w1: [H, C], b1: [H]      (first Linear)
      w2: [K, H], b2: [K]      (second Linear, K = n_components)
      tile_b: batch tile override (rounded up to a multiple of 128)
      use_bf16_matmul: feed the first matmul bf16 operands (halves the xT HBM
        read on every generation); bias add / ELU / second matmul / softmax
        stay in float32.
      return_probs: also emit probs = exp(norm_logits) from the kernel; set
        False to cut the output writeback roughly in half.
      transposed_io: take context as [C, B] and return [K, B] tensors,
        skipping the wrapper-side transpose passes (the kernel's native
        batch-in-lanes layout).

    Returns:
      (norm_logits, probs) if return_probs else norm_logits.
      These tensors define the OneHotCategorical distribution the PyTorch
      module returns.
    """
    if transposed_io:
        C, B = context.shape
    else:
        B, C = context.shape
    H, K = w1.shape[0], w2.shape[0]

    TB = _round_up(tile_b, 128) if tile_b is not None else _pick_tile(B)
    B_pad = _round_up(max(B, 1), TB)
    grid = (B_pad // TB,)

    in_dtype = jnp.bfloat16 if use_bf16_matmul else jnp.float32
    ctx_T = context.astype(in_dtype) if transposed_io else context.astype(in_dtype).T
    if B_pad == B:
        xT = ctx_T
    else:
        xT = jnp.zeros((C, B_pad), in_dtype).at[:, :B].set(ctx_T)
    w1_k = w1.astype(in_dtype)
    w2_k = w2.astype(jnp.float32)              # second matmul stays f32 (tiny)
    b1_k = b1.reshape(H, 1).astype(jnp.float32)
    b2_k = b2.reshape(K, 1).astype(jnp.float32)

    n_out = 2 if return_probs else 1
    bytes_accessed = (xT.size * xT.dtype.itemsize
                      + w1_k.size * w1_k.dtype.itemsize
                      + w2_k.size * w2_k.dtype.itemsize
                      + (H + K) * 4
                      + n_out * K * B_pad * 4)
    cost = pl.CostEstimate(
        flops=2 * B_pad * (C * H + H * K),
        transcendentals=B_pad * (H + 2 * K + 1),
        bytes_accessed=bytes_accessed)

    resident = lambda shape: pl.BlockSpec(shape, lambda i: (0, 0))
    out_tile_spec = pl.BlockSpec((K, TB), lambda i: (0, i))

    out_specs = tuple(out_tile_spec for _ in range(n_out))
    out_shape = tuple(jax.ShapeDtypeStruct((K, B_pad), jnp.float32)
                      for _ in range(n_out))

    outs = pl.pallas_call(
        _make_kernel(return_probs),
        grid=grid,
        in_specs=[
            pl.BlockSpec((C, TB), lambda i: (0, i)),   # context^T batch tile
            resident((H, C)),                          # W1 (VMEM-resident)
            resident((H, 1)),                          # b1
            resident((K, H)),                          # W2
            resident((K, 1)),                          # b2
        ],
        out_specs=out_specs,
        out_shape=out_shape,
        compiler_params=pltpu.CompilerParams(
            dimension_semantics=("parallel",)),
        cost_estimate=cost,
    )(xT, w1_k, b1_k, w2_k, b2_k)

    def _finish(arr_T):
        if transposed_io:
            return arr_T[:, :B]
        return arr_T.T[:B]

    if return_probs:
        return _finish(outs[0]), _finish(outs[1])
    return _finish(outs[0])


def init_params(key, context_size, hidden_dim, n_components):
    """Deterministic init mimicking nn.Linear (PyTorch [out, in] layout)."""
    k1, k2, k3, k4 = jax.random.split(key, 4)
    bound1 = 1.0 / (context_size ** 0.5)
    bound2 = 1.0 / (hidden_dim ** 0.5)
    w1 = jax.random.uniform(k1, (hidden_dim, context_size), jnp.float32,
                            -bound1, bound1)
    b1 = jax.random.uniform(k2, (hidden_dim,), jnp.float32, -bound1, bound1)
    w2 = jax.random.uniform(k3, (n_components, hidden_dim), jnp.float32,
                            -bound2, bound2)
    b2 = jax.random.uniform(k4, (n_components,), jnp.float32, -bound2, bound2)
    return w1, b1, w2, b2


def reference_forward(context, w1, b1, w2, b2):
    h = context @ w1.T + b1
    h = jnp.where(h > 0, h, jnp.expm1(h))
    logits = h @ w2.T + b2
    norm = logits - jax.nn.logsumexp(logits, axis=-1, keepdims=True)
    return norm, jnp.exp(norm)


if __name__ == "__main__":
    batch = 300            # default tiling -> TB=256, B_pad=512, grid=(2,)
    context_size = 32
    hidden_dim = 32        # hidden_dim defaults to context_size in the module
    n_components = 16

    key = jax.random.PRNGKey(0)
    k_ctx, k_par = jax.random.split(key)
    context = jax.random.normal(k_ctx, (batch, context_size), jnp.float32)
    w1, b1, w2, b2 = init_params(k_par, context_size, hidden_dim, n_components)

    ref_norm, ref_probs = reference_forward(context, w1, b1, w2, b2)

    # Default path: bf16 context/W1 MXU inputs, both outputs emitted.
    norm_logits, probs = categorical_network_forward(context, w1, b1, w2, b2)
    jax.block_until_ready((norm_logits, probs))
    assert norm_logits.shape == (batch, n_components)
    assert probs.shape == (batch, n_components)
    # probs are exp(norm_logits) in-kernel -> consistent and sum to 1 (f32).
    assert jnp.allclose(probs, jnp.exp(norm_logits), atol=1e-6, rtol=1e-5)
    assert jnp.allclose(jnp.sum(probs, axis=-1), 1.0, atol=1e-4)
    # bf16 first-matmul operands -> looser comparison vs. f32 reference.
    assert jnp.allclose(norm_logits, ref_norm, atol=5e-2, rtol=5e-2)
    assert jnp.allclose(probs, ref_probs, atol=5e-2, rtol=5e-2)

    # Full-f32 path: tight agreement with the reference.
    norm_f32, probs_f32 = categorical_network_forward(
        context, w1, b1, w2, b2, use_bf16_matmul=False)
    jax.block_until_ready((norm_f32, probs_f32))
    assert jnp.allclose(norm_f32, ref_norm, atol=1e-4, rtol=1e-4)
    assert jnp.allclose(probs_f32, ref_probs, atol=1e-4, rtol=1e-4)
    assert jnp.allclose(jnp.sum(probs_f32, axis=-1), 1.0, atol=1e-4)

    # Reduced-writeback path: norm_logits only (probs computed lazily by the
    # consumer, as torch's OneHotCategorical does).
    norm_only = categorical_network_forward(
        context, w1, b1, w2, b2, use_bf16_matmul=False, return_probs=False)
    jax.block_until_ready(norm_only)
    assert norm_only.shape == (batch, n_components)
    assert jnp.allclose(norm_only, ref_norm, atol=1e-4, rtol=1e-4)

    # Transposed-I/O path: no wrapper transpose passes ([C,B] in, [K,B] out).
    norm_T, probs_T = categorical_network_forward(
        context.T, w1, b1, w2, b2, use_bf16_matmul=False, transposed_io=True)
    jax.block_until_ready((norm_T, probs_T))
    assert norm_T.shape == (n_components, batch)
    assert jnp.allclose(norm_T.T, ref_norm, atol=1e-4, rtol=1e-4)
    assert jnp.allclose(probs_T.T, ref_probs, atol=1e-4, rtol=1e-4)

    # TODO(synk): context_size == 0 branch (bare learnable logits parameter)
    # is pure parameter passthrough with no compute to kernel-ize; stochastic
    # OneHotCategorical sampling is likewise not kernel-ized (the kernel
    # returns the distribution's defining tensors).

    print("KERNEL_OK")
</pallas_src>

<mosaic_0001>
module attributes {stable_mosaic.version = 11 : i64} {
  func.func @kernel(%arg0: i32, %arg1: memref<32x256xbf16, #tpu.memory_space<vmem>>, %arg2: memref<32x32xbf16, #tpu.memory_space<vmem>>, %arg3: memref<32x1xf32, #tpu.memory_space<vmem>>, %arg4: memref<16x32xf32, #tpu.memory_space<vmem>>, %arg5: memref<16x1xf32, #tpu.memory_space<vmem>>, %arg6: memref<16x256xf32, #tpu.memory_space<vmem>>, %arg7: memref<16x256xf32, #tpu.memory_space<vmem>>) attributes {dimension_semantics = [#tpu.dimension_semantics<parallel>], iteration_bounds = array<i64: 2>, scalar_prefetch = 0 : i64, scratch_operands = 0 : i64, tpu.core_type = #tpu.core_type<tc>, window_params = [{transform_indices = @transform_0, window_bounds = array<i64: 32, 256>}, {pipeline_mode = #tpu.pipeline_mode<synchronous>, transform_indices = @transform_1, window_bounds = array<i64: 32, 32>}, {pipeline_mode = #tpu.pipeline_mode<synchronous>, transform_indices = @transform_2, window_bounds = array<i64: 32, 1>}, {pipeline_mode = #tpu.pipeline_mode<synchronous>, transform_indices = @transform_3, window_bounds = array<i64: 16, 32>}, {pipeline_mode = #tpu.pipeline_mode<synchronous>, transform_indices = @transform_4, window_bounds = array<i64: 16, 1>}, {transform_indices = @transform_5, window_bounds = array<i64: 16, 256>}, {transform_indices = @transform_6, window_bounds = array<i64: 16, 256>}]} {
    %c0 = arith.constant 0 : index
    %c0_0 = arith.constant 0 : index
    %0 = vector.load %arg1[%c0, %c0_0] : memref<32x256xbf16, #tpu.memory_space<vmem>>, vector<32x256xbf16>
    %c0_1 = arith.constant 0 : index
    %c0_2 = arith.constant 0 : index
    %1 = vector.load %arg2[%c0_1, %c0_2] : memref<32x32xbf16, #tpu.memory_space<vmem>>, vector<32x32xbf16>
    %cst = arith.constant dense<0.000000e+00> : vector<32x256xf32>
    %2 = tpu.matmul %1, %0, %cst {dimension_numbers = #tpu.dot_dimension_numbers<[1], [0], [0], [1], [0, 0, 1, 1], [], []>} : vector<32x32xbf16>, vector<32x256xbf16>, vector<32x256xf32> -> vector<32x256xf32>
    %c0_3 = arith.constant 0 : index
    %c0_4 = arith.constant 0 : index
    %3 = vector.load %arg3[%c0_3, %c0_4] : memref<32x1xf32, #tpu.memory_space<vmem>>, vector<32x1xf32>
    %4 = vector.broadcast %3 : vector<32x1xf32> to vector<32x256xf32>
    %5 = arith.addf %2, %4 : vector<32x256xf32>
    %cst_5 = arith.constant 0.000000e+00 : f32
    %6 = vector.broadcast %cst_5 : f32 to vector<32x256xf32>
    %7 = arith.cmpf ogt, %5, %6 : vector<32x256xf32>
    %8 = math.exp %5 : vector<32x256xf32>
    %cst_6 = arith.constant 1.000000e+00 : f32
    %9 = vector.broadcast %cst_6 : f32 to vector<32x256xf32>
    %10 = arith.subf %8, %9 : vector<32x256xf32>
    %11 = arith.select %7, %5, %10 : vector<32x256xi1>, vector<32x256xf32>
    %c0_7 = arith.constant 0 : index
    %c0_8 = arith.constant 0 : index
    %12 = vector.load %arg4[%c0_7, %c0_8] : memref<16x32xf32, #tpu.memory_space<vmem>>, vector<16x32xf32>
    %cst_9 = arith.constant dense<0.000000e+00> : vector<16x256xf32>
    %13 = tpu.matmul %12, %11, %cst_9 {dimension_numbers = #tpu.dot_dimension_numbers<[1], [0], [0], [1], [0, 0, 1, 1], [], []>} : vector<16x32xf32>, vector<32x256xf32>, vector<16x256xf32> -> vector<16x256xf32>
    %c0_10 = arith.constant 0 : index
    %c0_11 = arith.constant 0 : index
    %14 = vector.load %arg5[%c0_10, %c0_11] : memref<16x1xf32, #tpu.memory_space<vmem>>, vector<16x1xf32>
    %15 = vector.broadcast %14 : vector<16x1xf32> to vector<16x256xf32>
    %16 = arith.addf %13, %15 : vector<16x256xf32>
    %cst_12 = arith.constant dense<0xFF800000> : vector<256xf32>
    %17 = vector.multi_reduction <maximumf>, %16, %cst_12 [0] : vector<16x256xf32> to vector<256xf32>
    %18 = vector.shape_cast %17 : vector<256xf32> to vector<1x256xf32>
    %19 = vector.broadcast %18 : vector<1x256xf32> to vector<16x256xf32>
    %20 = arith.subf %16, %19 : vector<16x256xf32>
    %21 = math.exp %20 : vector<16x256xf32>
    %cst_13 = arith.constant dense<0.000000e+00> : vector<256xf32>
    %22 = vector.multi_reduction <add>, %21, %cst_13 [0] : vector<16x256xf32> to vector<256xf32>
    %23 = vector.shape_cast %22 : vector<256xf32> to vector<1x256xf32>
    %24 = math.log %23 : vector<1x256xf32>
    %25 = vector.broadcast %24 : vector<1x256xf32> to vector<16x256xf32>
    %26 = arith.subf %20, %25 : vector<16x256xf32>
    %c0_14 = arith.constant 0 : index
    %c0_15 = arith.constant 0 : index
    %27 = vector.load %arg6[%c0_14, %c0_15] : memref<16x256xf32, #tpu.memory_space<vmem>>, vector<16x256xf32>
    tpu.vector_store %arg6[%c0_14, %c0_15], %26 {strides = array<i32>} : memref<16x256xf32, #tpu.memory_space<vmem>>, vector<16x256xf32>,
    %28 = math.exp %26 : vector<16x256xf32>
    %c0_16 = arith.constant 0 : index
    %c0_17 = arith.constant 0 : index
    %29 = vector.load %arg7[%c0_16, %c0_17] : memref<16x256xf32, #tpu.memory_space<vmem>>, vector<16x256xf32>
    tpu.vector_store %arg7[%c0_16, %c0_17], %28 {strides = array<i32>} : memref<16x256xf32, #tpu.memory_space<vmem>>, vector<16x256xf32>,
    return
  }
  func.func @transform_0(%arg0: i32) -> (i32, i32) {
    %c0_i32 = arith.constant 0 : i32
    %c0_i32_0 = arith.constant 0 : i32
    return %c0_i32, %arg0 : i32, i32
  }
  func.func @transform_1(%arg0: i32) -> (i32, i32) {
    %c0_i32 = arith.constant 0 : i32
    %c0_i32_0 = arith.constant 0 : i32
    %c0_i32_1 = arith.constant 0 : i32
    return %c0_i32, %c0_i32_0 : i32, i32
  }
  func.func @transform_2(%arg0: i32) -> (i32, i32) {
    %c0_i32 = arith.constant 0 : i32
    %c0_i32_0 = arith.constant 0 : i32
    %c0_i32_1 = arith.constant 0 : i32
    return %c0_i32, %c0_i32_0 : i32, i32
  }
  func.func @transform_3(%arg0: i32) -> (i32, i32) {
    %c0_i32 = arith.constant 0 : i32
    %c0_i32_0 = arith.constant 0 : i32
    %c0_i32_1 = arith.constant 0 : i32
    return %c0_i32, %c0_i32_0 : i32, i32
  }
  func.func @transform_4(%arg0: i32) -> (i32, i32) {
    %c0_i32 = arith.constant 0 : i32
    %c0_i32_0 = arith.constant 0 : i32
    %c0_i32_1 = arith.constant 0 : i32
    return %c0_i32, %c0_i32_0 : i32, i32
  }
  func.func @transform_5(%arg0: i32) -> (i32, i32) {
    %c0_i32 = arith.constant 0 : i32
    %c0_i32_0 = arith.constant 0 : i32
    return %c0_i32, %arg0 : i32, i32
  }
  func.func @transform_6(%arg0: i32) -> (i32, i32) {
    %c0_i32 = arith.constant 0 : i32
    %c0_i32_0 = arith.constant 0 : i32
    return %c0_i32, %arg0 : i32, i32
  }
}

</mosaic_0001>

<bundles_post_ra>
// kernel: tpu_custom_call.1
= control target key start
LH: loop header
LB: loop body
LE: loop exit
PB: predicated region body
PF: predicated region fallthrough
CT: control target
= control target key end

     0   :  { %12 = vsyncpa [#allocation3], 0  ;;  %s1297_s0 = inlined_call_operand.hbm [shape: bf16[32,512], index: 0, kind: input, shape index: {}]   ;;  %s1298_s1 = inlined_call_operand.vmem [shape: bf16[32,32], index: 1, kind: input, shape index: {}]   ;;  %s1299_s2 = inlined_call_operand.vmem [shape: f32[32,1], index: 2, kind: input, shape index: {}]   ;;  %s1300_s3 = inlined_call_operand.vmem [shape: f32[16,32], index: 3, kind: input, shape index: {}]   ;;  %s1301_s4 = inlined_call_operand.vmem [shape: f32[16,1], index: 4, kind: input, shape index: {}]   ;;  %s1302_s5 = inlined_call_operand.hbm [shape: f32[16,512], index: 5, kind: output, shape index: {0}]   ;;  %s1303_s6 = inlined_call_operand.hbm [shape: f32[16,512], index: 6, kind: output, shape index: {1}]  }
   0x1   :  { %14 = vsyncpa [#allocation3 + $0x1], 0 }
   0x2   :  { %15 = vsyncpa [#allocation4], 0 }
   0x3   :  { %17 = vsyncpa [#allocation4 + $0x1], 0 }
   0x4   :  { %18 = vsyncpa [#allocation7], 0 }
   0x5   :  { %20 = vsyncpa [#allocation7 + $0x1], 0  ;;  %s1062_s21 = smov 0   ;;  %s1064_s22 = smov 0  }
   0x6   :  { %s1066_s23 = smov 0   ;;  %s1068_s24 = smov 0  }
   0x7 LB: > { %s1083_s25 = sadd.s32 4294967295, %s1014_s24   ;;  %s748_s26 = sadd.s32 4294967294, %s1014_s24   ;;  %s1014_s24 = sphi %s1068_s24, %s1319_s24   ;;  %s1010_s23 = sphi %s1066_s23, %s1318_s23   ;;  %s1006_s22 = sphi %s1064_s22, %s1317_s22   ;;  %s1002_s21 = sphi %s1062_s21, %s1316_s21  }
   0x8   : > { %s1087_s27 = sadd.s32 1, %s1014_s24   ;;  %s33_s28 = sadd.s32 1, %s1010_s23 }
   0x9   : > { %s30_s29 = ssub.s32 %s1014_s24, %s1087_s27  ;;  %p40_p0 = scmp.ne.s32.totalorder %s1010_s23, %s1006_s22 }
   0xa   : > { %p31_p1 = scmp.eq.s32.totalorder %s30_s29, 0  ;;  %p41_p2 = scmp.eq.s32.totalorder %s1014_s24, 0 }
   0xb   : > { %p46_p3 = scmp.ne.s32.totalorder %s1006_s22, %s1002_s21  ;;  %p47_p4 = scmp.eq.s32.totalorder %s1083_s25, 0 }
   0xc   : > { %s1099_s30 = scalar_select %p31_p1, %s1010_s23, %s33_s28  }
   0xd   : > { %p1101_p5 = por %p41_p2, %p40_p0  ;;  %p1105_p6 = por %p47_p4, %p46_p3 }
   0xe   : > { %p154_p7 = scmp.eq.s32.totalorder %s1083_s25, 1  ;;  %p160_p8 = scmp.eq.s32.totalorder %s748_s26, 1 }
   0xf   : > { %s1307_s8 = scalar_select %p1105_p6, 1, 0 }
  0x10   : > { %p804_p10 = scmp.lt.s32.totalorder %s1014_s24, 2  ;;  %p1112_p11 = por %p154_p7, %p40_p0 }
  0x11   : > { %p1116_p12 = por %p160_p8, %p46_p3  ;;  %s218_s11 = sand.u32 1, %s1010_s23  }
  0x12   : > { %s1308_s9 = scalar_select %p1112_p11, 1, 0 }
  0x13   : > { %s1309_s10 = scalar_select %p1116_p12, 1, 0 }
  0x14   : > { %s784_s12 = sshll.u32 %s1014_s24, 7  ;;  %s751_s13 = sshll.u32 %s218_s11, 5 }
  0x15   : > { %s1125_s16 = scalar_lea.hbm %s1297_s0, %s784_s12  ;;  %s222_s17 = scalar_lea.vmem [#allocation2], %s751_s13 }
  0x16   : > { %s229_s18 = sshll.u32 %s222_s17, 4  ;;  %p1129_p13 = pnand %p804_p10, %p1101_p5  ;;  %s1133_s18 = int_to_ptr.vmem [resolvable:$true] %s229_s18 }
  0x17   : > { %s1136_s20 = scalar_lea.sflag [#allocation3], %s218_s11  ;;  %s892_s26 = scalar_lea.hbm %s1125_s16, 512 }
  0x18   : > { %p893_p1 = scmp.ne.s32.totalorder %s1125_s16, %s892_s26  ;;  %p894_p2 = pneg %p1129_p13 }
  0x19   : > { %s897_s7 = scalar_lea.hbm %s1297_s0, 1024  ;;  %p898_p5 = scmp.lt.s32.totalorder %s1125_s16, %s1297_s0 }
  0x1a   : > { %p895_p3 = pnand %p894_p2, %p893_p1  ;;  %p899_p7 = scmp.lt.s32.totalorder %s897_s7, %s892_s26 }
  0x1c   : > { %p896_p4 = pneg %p895_p3  ;;  %p900_p8 = por %p899_p7, %p898_p5 }
  0x1e   : > { %p901_p10 = pnand %p900_p8, %p896_p4 }
  0x20   : > { %904 = shalt.err (!%p901_p10)
}
  0x21   : > { %s905_s11 = scalar_lea.vmem %s1133_s18, 512  ;;  %s1016_s14 = smov [#allocation2]  }
  0x22   : > { %p906_p9 = scmp.ne.s32.totalorder %s1133_s18, %s905_s11  ;;  %s910_s15 = sshll.u32 %s1016_s14, 4  ;;  %s911_s15 = int_to_ptr.vmem [resolvable:$false] %s910_s15 }
  0x23   : > { %s912_s17 = scalar_lea.vmem %s911_s15, 1024  ;;  %p913_p3 = scmp.lt.s32.totalorder %s1133_s18, %s911_s15 }
  0x24   : > { %p908_p0 = pnand %p906_p9, %p894_p2  ;;  %p914_p12 = scmp.lt.s32.totalorder %s912_s17, %s905_s11 }
  0x26   : > { %p909_p1 = pneg %p908_p0  ;;  %p915_p11 = por %p914_p12, %p913_p3 }
  0x28   : > { %p916_p6 = pnand %p915_p11, %p909_p1 }
  0x2a   : > { %919 = shalt.err (!%p916_p6)
}
  0x2b   : > { %s1017_s26 = smov 256   ;;  %s1018_s28 = smov 128  }
  0x2c   : > { %s1019_s29 = smov 8   ;;  %p237_p9 = scmp.lt.s32.totalorder %s1014_s24, 3 }
  0x2d   : > { %796 = dma.hbm_to_vmem [thread:$0]  (!%p1129_p13), %s1125_s16, 512, %s1133_s18, %s1136_s20, %s1017_s26, %s1018_s28, %s1019_s29  }
  0x2e   : > { %p1311_p0 = scmp.ge.s32.totalorder %s1014_s24, 1 }
  0x30   : > { %p238_p2 = pnand %p1311_p0, %p237_p9 }
  0x31   : > { %s1161_s7 = sand.u32 (!%p238_p2), 1, %s1006_s22   ;;  %p1312_p6 = scmp.ne.s32.totalorder (!%p238_p2), %s1307_s8, 0 }
  0x32   : > { %241 = sbr.rel (%p238_p2) target bundleno = 609 (0x261), region = 40  ;;  %s1164_s12 = sshll.u32 (!%p238_p2), %s1161_s7, 5 }
  0x33   : > { %s244_s13 = scalar_lea.sflag (!%p238_p2), [#allocation3], %s1161_s7  ;;  %s247_s11 = scalar_lea.vmem (!%p238_p2), [#allocation2], %s1164_s12 }
  0x37   : > { %989 = dma.done.wait (%p1312_p6), %s244_s13, 512  }
  0x38   : > { %991 = vsyncadd (%p1312_p6), %s244_s13, 4294966784  ;;  %v1020_v0 = vmov 0   ;;  %v848_v1 = vld [vmem:[%s247_s11 + $0x14] ss:$8 sps:$4 sm:$0xff]   ;;  %v850_v2 = vld [vmem:[%s247_s11 + $0x10] ss:$8 sps:$4 sm:$0xff]  }
  0x39   : > { %386 = vmatprep.mubr.bf16.mxu0 %v1020_v0  ;;  %847 = vset.pattern.permute.xlu1 %v1020_v0  ;;  %v851_v3 = vld [vmem:[%s247_s11 + $0x4] ss:$8 sps:$4 sm:$0xff]   ;;  %v853_v4 = vld [vmem:[%s247_s11] ss:$8 sps:$4 sm:$0xff]   ;;  %v296_v6 = vld [vmem:[%s1299_s2 + $0x18] sm:$0xff]  ;;  %vm347_vm0 = vcmask 261120  }
  0x3a   : > { %846 = vset.pattern.permute.xlu0 %v1020_v0  ;;  %366 = vmatprep.subr.bf16.mxu0 %v848_v1  ;;  %v294_v5 = vld [vmem:[%s1299_s2 + $0x8] sm:$0xff]  ;;  %v854_v7 = vld [vmem:[%s1298_s1] sm:$0xff]   ;;  %v295_v9 = vld [vmem:[%s1299_s2 + $0x10] sm:$0xff]  ;;  %v1021_v13 = vmov 0.0   ;;  %s273_s17 = scalar_lea.vmem [#allocation5], %s1164_s12  ;;  %s785_s28 = sshll.u32 %s1083_s25, 8 }
  0x3b   : > { %367 = vmatpush1.bf16.msra.mxu0 %v850_v2  ;;  %304 = vperm.xlu1 %847, %v294_v5   ;;  %v293_v8 = vld [vmem:[%s1299_s2] sm:$0xff]  ;;  %v450_v10 = vld [vmem:[%s1301_s4 + $0x8] sm:$0xff]  ;;  %s627_s26 = sshll.u32 %s273_s17, 4  ;;  %s1217_s11 = scalar_lea.hbm %s1302_s5, %s785_s28  ;;  %s1210_s26 = int_to_ptr.vmem [resolvable:$true] %s627_s26 }
  0x3c   : > { %368 = vmatprep.subr.bf16.mxu0 %v851_v3  ;;  %314 = vperm.xlu0 %846, %v296_v6   ;;  %v449_v11 = vld [vmem:[%s1301_s4] sm:$0xff]  ;;  %v855_v12 = vld [vmem:[%s1298_s1 + $0x8] sm:$0xff]   ;;  %s609_s16 = scalar_lea.sflag [#allocation4], %s1161_s7  ;;  %s920_s18 = scalar_lea.vmem %s1210_s26, 512 }
  0x3d   : > { %531 = vmatprep.mubr.f32.mxu1 %v1021_v13  ;;  %v447_v1 = vld [vmem:[%s1300_s3] sm:$0xff]  ;;  %v448_v3 = vld [vmem:[%s1300_s3 + $0x8] sm:$0xff]  ;;  %p921_p11 = scmp.ne.s32.totalorder %s1210_s26, %s920_s18  ;;  %p1313_p12 = scmp.ne.s32.totalorder %s1308_s9, 0 }
  0x3e   : > { %s1022_s19 = smov [#allocation5]  }
  0x3f   : > { %369 = vmatpush1.bf16.msra.mxu0 %v853_v4  ;;  %299 = vperm.xlu1 %847, %v293_v8   ;;  %p922_p13 = pnand %p921_p11, %p1313_p12  ;;  %s924_s20 = sshll.u32 %s1022_s19, 4  ;;  %s925_s20 = int_to_ptr.vmem [resolvable:$false] %s924_s20 }
  0x40   : > { %309 = vperm.xlu0 %846, %v295_v9   ;;  %s926_s8 = scalar_lea.vmem %s925_s20, 1024  ;;  %p927_p5 = scmp.lt.s32.totalorder %s1210_s26, %s925_s20 }
  0x41   : > { %p923_p4 = pneg %p922_p13  ;;  %p928_p7 = scmp.lt.s32.totalorder %s926_s8, %s920_s18 }
  0x42   : > { %764 = vmatmul.mubr.msk.bf16.vlgmr.msra.gmra.mxu0 %vm347_vm0, %v854_v7 }
  0x43   : > { %396 = vmatprep.mubr.bf16.mxu0 %v1020_v0  ;;  %458 = vperm.xlu1 %847, %v450_v10   ;;  %p929_p8 = por %p928_p7, %p927_p5 }
  0x44   : > { %453 = vperm.xlu0 %846, %v449_v11  }
  0x45   : > { %p930_p10 = pnand %p929_p8, %p923_p4 }
  0x4a   : > { %765 = vmatmul.mubr.msk.bf16.gmra.mxu0 %vm347_vm0, %v855_v12 }
  0xb6   : > { %v305_v18 = vpop.permute.xlu1 %304 }
  0xb7   : > { %v315_v15 = vpop.permute.xlu0 %314 }
  0xba   : > { %v300_v25 = vpop.permute.xlu1 %299 }
  0xbb   : > { %v310_v21 = vpop.permute.xlu0 %309 }
  0xbe   : > { %v459_v6 = vpop.permute.xlu1 %458 }
  0xbf   : > { %v454_v7 = vpop.permute.xlu0 %453 }
 0x102   : > { %v388_v14 = vpop.f32.mrf.mxu0 }
 0x103   : > { %v389_v33 = vadd.f32 %v388_v14, %v300_v25 }
 0x104   : > { %v390_v16 = vpop.f32.mrf.mxu0 }
 0x105   : > { %v391_v30 = vadd.f32 %v390_v16, %v300_v25  ;;  %v415_v41 = vmul.f32 1.442695, %v389_v33  ;;  %vm407_vm8 = vcmp.gt.f32.partialorder %v389_v33, 0.0 }
 0x106   : > { %v392_v17 = vpop.f32.mrf.mxu0 }
 0x107   : > { %v393_v28 = vadd.f32 %v392_v17, %v305_v18  ;;  %v417_v39 = vmul.f32 1.442695, %v391_v30  ;;  %vm408_vm7 = vcmp.gt.f32.partialorder %v391_v30, 0.0 }
 0x108   : > { %v394_v19 = vpop.f32.mrf.mxu0 }
 0x109   : > { %v395_v20 = vadd.f32 %v394_v19, %v305_v18  ;;  %v419_v38 = vmul.f32 1.442695, %v393_v28  ;;  %vm409_vm6 = vcmp.gt.f32.partialorder %v393_v28, 0.0 }
 0x10a   : > { %v398_v22 = vpop.f32.mrf.mxu0 }
 0x10b   : > { %v399_v23 = vadd.f32 %v398_v22, %v310_v21  ;;  %v421_v26 = vmul.f32 1.442695, %v395_v20  ;;  %vm410_vm5 = vcmp.gt.f32.partialorder %v395_v20, 0.0 }
 0x10c   : > { %v400_v24 = vpop.f32.mrf.mxu0 }
 0x10d   : > { %v401_v27 = vadd.f32 %v400_v24, %v310_v21  ;;  %v423_v34 = vmul.f32 1.442695, %v399_v23  ;;  %856 = vpow2.f32 %v421_v26  ;;  %vm411_vm4 = vcmp.gt.f32.partialorder %v399_v23, 0.0 }
 0x10e   : > { %v402_v29 = vpop.f32.mrf.mxu0 }
 0x10f   : > { %v425_v31 = vmul.f32 1.442695, %v401_v27  ;;  %v403_v32 = vadd.f32 %v402_v29, %v315_v15  ;;  %vm412_vm3 = vcmp.gt.f32.partialorder %v401_v27, 0.0 }
 0x110   : > { %v404_v35 = vpop.f32.mrf.mxu0 }
 0x111   : > { %v427_v36 = vmul.f32 1.442695, %v403_v32  ;;  %v405_v37 = vadd.f32 %v404_v35, %v315_v15  ;;  %858 = vpow2.f32 %v425_v31  ;;  %vm413_vm2 = vcmp.gt.f32.partialorder %v403_v32, 0.0 }
 0x113   : > { %860 = vpow2.f32 %v427_v36  ;;  %v429_v40 = vmul.f32 1.442695, %v405_v37  ;;  %vm414_vm1 = vcmp.gt.f32.partialorder %v405_v37, 0.0 }
 0x114   : > { %862 = vpow2.f32 %v423_v34 }
 0x115   : > { %864 = vpow2.f32 %v429_v40 }
 0x116   : > { %866 = vpow2.f32 %v419_v38 }
 0x117   : > { %868 = vpow2.f32 %v417_v39 }
 0x118   : > { %870 = vpow2.f32 %v415_v41 }
 0x11a   : > { %v857_v42 = vpop.eup %856 }
 0x11b   : > { %v769_v55 = vadd.f32 -1.0, %v857_v42 }
 0x11d   : > { %v442_v62 = vsel %vm410_vm5, %v395_v20, %v769_v55 }
 0x11e   : > { %v859_v43 = vpop.eup %858 }
 0x11f   : > { %v771_v50 = vadd.f32 -1.0, %v859_v43 }
 0x120   : > { %v861_v44 = vpop.eup %860 }
 0x121   : > { %v863_v45 = vpop.eup %862  ;;  %v772_v47 = vadd.f32 -1.0, %v861_v44  ;;  %v444_v58 = vsel %vm412_vm3, %v401_v27, %v771_v50 }
 0x122   : > { %v865_v46 = vpop.eup %864  ;;  %v770_v52 = vadd.f32 -1.0, %v863_v45 }
 0x123   : > { %v867_v48 = vpop.eup %866  ;;  %v773_v49 = vadd.f32 -1.0, %v865_v46  ;;  %v445_v56 = vsel %vm413_vm2, %v403_v32, %v772_v47 }
 0x124   : > { %v869_v51 = vpop.eup %868  ;;  %v768_v57 = vadd.f32 -1.0, %v867_v48  ;;  %v443_v60 = vsel %vm411_vm4, %v399_v23, %v770_v52 }
 0x125   : > { %v871_v53 = vpop.eup %870  ;;  %v446_v54 = vsel %vm414_vm1, %v405_v37, %v773_v49  ;;  %v767_v59 = vadd.f32 -1.0, %v869_v51 }
 0x126   : > { %491 = vmatprep.subr.mxu1 %v446_v54  ;;  %v766_v61 = vadd.f32 -1.0, %v871_v53  ;;  %v441_v63 = vsel %vm409_vm6, %v393_v28, %v768_v57 }
 0x127   : > { %492 = vmatpush1.msra.mxu1 %v445_v56  ;;  %v440_v0 = vsel %vm408_vm7, %v391_v30, %v767_v59 }
 0x128   : > { %493 = vmatprep.subr.mxu1 %v444_v58  ;;  %v439_v2 = vsel %vm407_vm8, %v389_v33, %v766_v61 }
 0x129   : > { %494 = vmatpush1.msra.mxu1 %v443_v60 }
 0x12a   : > { %495 = vmatprep.subr.mxu1 %v442_v62 }
 0x12b   : > { %496 = vmatpush1.msra.mxu1 %v441_v63 }
 0x12c   : > { %497 = vmatprep.subr.mxu1 %v440_v0 }
 0x12d   : > { %498 = vmatpush1.msra.mxu1 %v439_v2 }
 0x12e   : > { %774 = vmatmul.mubr.msk.f32.vlgmr.msra.gmra.mxu1 %vm347_vm0, %v447_v1 }
 0x12f   : > { %537 = vmatprep.mubr.f32.mxu1 %v1021_v13 }
 0x132   : > { %775 = vmatmul.mubr.msk.f32.gmra.mxu1 %vm347_vm0, %v448_v3 }
 0x1ee   : > { %v533_v4 = vpop.f32.mrf.mxu1 }
 0x1ef   : > { %v534_v9 = vadd.f32 %v533_v4, %v454_v7 }
 0x1f0   : > { %v535_v5 = vpop.f32.mrf.mxu1 }
 0x1f1   : > { %v536_v12 = vadd.f32 %v535_v5, %v454_v7 }
 0x1f2   : > { %v539_v8 = vpop.f32.mrf.mxu1 }
 0x1f3   : > { %v540_v10 = vadd.f32 %v539_v8, %v459_v6 }
 0x1f4   : > { %v541_v11 = vpop.f32.mrf.mxu1 }
 0x1f5   : > { %v544_v14 = vmax.f32 %v534_v9, %v540_v10  ;;  %v542_v15 = vadd.f32 %v541_v11, %v459_v6 }
 0x1f7   : > { %v545_v16 = vrot.slane %v544_v14, 4  ;;  %v551_v17 = vmax.f32 %v536_v12, %v542_v15 }
 0x1f9   : > { %v546_v13 = vmax.f32 %v544_v14, %v545_v16  ;;  %v552_v18 = vrot.slane %v551_v17, 4 }
 0x1fb   : > { %v547_v19 = vrot.slane %v546_v13, 2  ;;  %v553_v20 = vmax.f32 %v551_v17, %v552_v18 }
 0x1fd   : > { %v548_v21 = vmax.f32 %v546_v13, %v547_v19  ;;  %v554_v22 = vrot.slane %v553_v20, 2 }
 0x1ff   : > { %v549_v23 = vrot.slane %v548_v21, 1  ;;  %v555_v24 = vmax.f32 %v553_v20, %v554_v22 }
 0x201   : > { %v550_v25 = vmax.f32 %v548_v21, %v549_v23  ;;  %v556_v26 = vrot.slane %v555_v24, 1 }
 0x203   : > { %v558_v27 = vsub.f32 %v534_v9, %v550_v25  ;;  %v560_v28 = vsub.f32 %v540_v10, %v550_v25  ;;  %v557_v29 = vmax.f32 %v555_v24, %v556_v26 }
 0x205   : > { %v562_v30 = vmul.f32 1.442695, %v558_v27  ;;  %v566_v31 = vmul.f32 1.442695, %v560_v28  ;;  %v559_v32 = vsub.f32 %v536_v12, %v557_v29  ;;  %v561_v33 = vsub.f32 %v542_v15, %v557_v29 }
 0x207   : > { %872 = vpow2.f32 %v562_v30  ;;  %v564_v34 = vmul.f32 1.442695, %v559_v32  ;;  %v568_v35 = vmul.f32 1.442695, %v561_v33 }
 0x208   : > { %874 = vpow2.f32 %v566_v31 }
 0x209   : > { %876 = vpow2.f32 %v564_v34 }
 0x20a   : > { %878 = vpow2.f32 %v568_v35 }
 0x214   : > { %v873_v36 = vpop.eup %872 }
 0x215   : > { %v875_v37 = vpop.eup %874 }
 0x216   : > { %v877_v38 = vpop.eup %876  ;;  %v570_v39 = vadd.f32 %v875_v37, %v873_v36 }
 0x217   : > { %v879_v40 = vpop.eup %878 }
 0x218   : > { %v571_v41 = vrot.slane %v570_v39, 4  ;;  %v577_v42 = vadd.f32 %v879_v40, %v877_v38 }
 0x21a   : > { %v572_v43 = vadd.f32 %v571_v41, %v570_v39  ;;  %v578_v44 = vrot.slane %v577_v42, 4 }
 0x21c   : > { %v573_v45 = vrot.slane %v572_v43, 2  ;;  %v579_v46 = vadd.f32 %v578_v44, %v577_v42 }
 0x21e   : > { %v574_v47 = vadd.f32 %v573_v45, %v572_v43  ;;  %v580_v48 = vrot.slane %v579_v46, 2 }
 0x220   : > { %v575_v49 = vrot.slane %v574_v47, 1  ;;  %v581_v50 = vadd.f32 %v580_v48, %v579_v46 }
 0x222   : > { %v576_v51 = vadd.f32 %v575_v49, %v574_v47  ;;  %v582_v52 = vrot.slane %v581_v50, 1 }
 0x224   : > { %880 = vlog2.f32 %v576_v51  ;;  %v583_v53 = vadd.f32 %v582_v52, %v581_v50 }
 0x226   : > { %882 = vlog2.f32 %v583_v53 }
 0x231   : > { %v881_v54 = vpop.eup %880 }
 0x232   : > { %v585_v55 = vmul.f32 0.6931472, %v881_v54 }
 0x233   : > { %v883_v56 = vpop.eup %882 }
 0x234   : > { %v588_v57 = vsub.f32 %v558_v27, %v585_v55  ;;  %v590_v58 = vsub.f32 %v560_v28, %v585_v55  ;;  %v587_v59 = vmul.f32 0.6931472, %v883_v56 }
 0x236   : > { %592 = vst [vmem:[%s273_s17] sm:$0xff] %v588_v57  ;;  %594 = vst [vmem:[%s273_s17 + $0x10] sm:$0xff] %v590_v58  ;;  %v596_v60 = vmul.f32 1.442695, %v588_v57  ;;  %v600_v61 = vmul.f32 1.442695, %v590_v58  ;;  %v589_v62 = vsub.f32 %v559_v32, %v587_v59  ;;  %v591_v63 = vsub.f32 %v561_v33, %v587_v59 }
 0x238   : > { %884 = vpow2.f32 %v596_v60  ;;  %593 = vst [vmem:[%s273_s17 + $0x8] sm:$0xff] %v589_v62  ;;  %595 = vst [vmem:[%s273_s17 + $0x18] sm:$0xff] %v591_v63  ;;  %v598_v0 = vmul.f32 1.442695, %v589_v62  ;;  %v602_v1 = vmul.f32 1.442695, %v591_v63 }
 0x239   : > { %886 = vpow2.f32 %v600_v61 }
 0x23a   : > { %933 = shalt.err (!%p930_p10)
}
 0x23b   : > { %s934_s14 = scalar_lea.hbm %s1217_s11, 512  ;;  %s938_s29 = scalar_lea.hbm %s1302_s5, 1024 }
 0x23c   : > { %p935_p1 = scmp.ne.s32.totalorder %s1217_s11, %s934_s14  ;;  %p939_p0 = scmp.lt.s32.totalorder %s1217_s11, %s1302_s5 }
 0x23d   : > { %p940_p2 = scmp.lt.s32.totalorder %s938_s29, %s934_s14 }
 0x23e   : > { %p936_p3 = pnand %p935_p1, %p1313_p12 }
 0x23f   : > { %p941_p6 = por %p940_p2, %p939_p0 }
 0x240   : > { %p937_p9 = pneg %p936_p3 }
 0x242   : > { %p942_p11 = pnand %p941_p6, %p937_p9 }
 0x244   : > { %945 = shalt.err (!%p942_p11)
}
 0x245   : > { %s1023_s18 = smov 256   ;;  %s1024_s20 = smov 512   ;;  %888 = vpow2.f32 %v598_v0  ;;  %v885_v2 = vpop.eup %884 }
 0x246   : > { %s1025_s8 = smov 16   ;;  %890 = vpow2.f32 %v602_v1  ;;  %s280_s14 = scalar_lea.vmem [#allocation6], %s1164_s12  ;;  %v887_v3 = vpop.eup %886 }
 0x247   : > { %789 = dma.vmem_to_hbm [thread:$0]  (%p1313_p12), %s1210_s26, 512, %s1217_s11, %s609_s16, %s1023_s18, %s1024_s20, %s1025_s8  }
 0x248   : > { %s643_s15 = sshll.u32 %s280_s14, 4  ;;  %604 = vst [vmem:[%s280_s14] sm:$0xff] %v885_v2  ;;  %606 = vst [vmem:[%s280_s14 + $0x10] sm:$0xff] %v887_v3  ;;  %s1251_s13 = scalar_lea.hbm %s1303_s6, %s785_s28  ;;  %s1253_s15 = int_to_ptr.vmem [resolvable:$true] %s643_s15 }
 0x249   : > { %s614_s12 = scalar_lea.sflag [#allocation7], %s1161_s7  ;;  %s946_s26 = scalar_lea.vmem %s1253_s15, 512 }
 0x24a   : > { %p947_p13 = scmp.ne.s32.totalorder %s1253_s15, %s946_s26  ;;  %s1026_s25 = smov [#allocation6]  }
 0x24b   : > { %s950_s11 = sshll.u32 %s1026_s25, 4  ;;  %s951_s11 = int_to_ptr.vmem [resolvable:$false] %s950_s11 }
 0x24c   : > { %p948_p4 = pnand %p947_p13, %p1313_p12  ;;  %s952_s16 = scalar_lea.vmem %s951_s11, 1024 }
 0x24d   : > { %p953_p7 = scmp.lt.s32.totalorder %s1253_s15, %s951_s11  ;;  %p954_p8 = scmp.lt.s32.totalorder %s952_s16, %s946_s26 }
 0x24e   : > { %p949_p5 = pneg %p948_p4 }
 0x24f   : > { %p955_p10 = por %p954_p8, %p953_p7 }
 0x251   : > { %p956_p1 = pnand %p955_p10, %p949_p5 }
 0x252   : > { %v889_v4 = vpop.eup %888 }
 0x253   : > { %v891_v5 = vpop.eup %890  ;;  %605 = vst [vmem:[%s280_s14 + $0x8] sm:$0xff] %v889_v4 }
 0x254   : > { %607 = vst [vmem:[%s280_s14 + $0x18] sm:$0xff] %v891_v5 }
 0x255   : > { %959 = shalt.err (!%p956_p1)
}
 0x256   : > { %s960_s28 = scalar_lea.hbm %s1251_s13, 512  ;;  %s964_s14 = scalar_lea.hbm %s1303_s6, 1024 }
 0x257   : > { %p961_p3 = scmp.ne.s32.totalorder %s1251_s13, %s960_s28  ;;  %p965_p2 = scmp.lt.s32.totalorder %s1251_s13, %s1303_s6 }
 0x258   : > { %p966_p6 = scmp.lt.s32.totalorder %s964_s14, %s960_s28 }
 0x259   : > { %p962_p9 = pnand %p961_p3, %p1313_p12 }
 0x25a   : > { %p967_p11 = por %p966_p6, %p965_p2 }
 0x25b   : > { %p963_p0 = pneg %p962_p9 }
 0x25d   : > { %p968_p13 = pnand %p967_p11, %p963_p0 }
 0x25f   : > { %971 = shalt.err (!%p968_p13)
}
 0x260   : > { %790 = dma.vmem_to_hbm [thread:$0]  (%p1313_p12), %s1253_s15, 512, %s1251_s13, %s614_s12, %s1023_s18, %s1024_s20, %s1025_s8  }
 0x261 PF: > { %s658_s26 = sand.u32 1, %s1002_s21   ;;  %p1314_p4 = scmp.ne.s32.totalorder %s1309_s10, 0 }
 0x262   : > { %p1315_p5 = scmp.ge.s32.totalorder %s1014_s24, 2  ;;  %s659_s25 = scalar_lea.sflag [#allocation4], %s658_s26 }
 0x264   : > { %p798_p7 = pnand %p1315_p5, %p1314_p4 }
 0x266   : > { %p799_p8 = pneg %p798_p7 }
 0x268   : > { %993 = dma.done.wait (%p799_p8), %s659_s25, 512  }
 0x269   : > { %995 = vsyncadd (%p799_p8), %s659_s25, 4294966784  ;;  %s668_s11 = scalar_lea.sflag [#allocation7], %s658_s26 }
 0x26a   : > { %997 = dma.done.wait (%p799_p8), %s668_s11, 512  }
 0x26b   : > { %999 = vsyncadd (%p799_p8), %s668_s11, 4294966784  ;;  %p23_p12 = scmp.ge.s32.totalorder %s1087_s27, 4   ;;  %s1316_s21 = smov %s1006_s22 }
 0x26c   : > { %s1317_s22 = smov %s1010_s23  ;;  %s1318_s23 = smov %s1099_s30 }
 0x26d   : > { %s1319_s24 = smov %s1087_s27  ;;  %25 = sbr.rel (!%p23_p12) target bundleno = 7 (0x7), region = 102 }
 0x272   :  { %673 = vsyncpa [#allocation3], 1 }
 0x273   :  { %675 = vsyncpa [#allocation3 + $0x1], 1 }
 0x274   :  { %676 = vsyncpa [#allocation4], 1 }
 0x275   :  { %678 = vsyncpa [#allocation4 + $0x1], 1 }
 0x276   :  { %679 = vsyncpa [#allocation7], 1 }
 0x277   :  { %681 = vsyncpa [#allocation7 + $0x1], 1 }

</bundles_post_ra>
